<compile_context>
chip_gen: v7x
topology: tpu7x:2x2x1
jax: 0.10.0
libtpu: 0.0.40
codegen_flags: <defaults>
</compile_context>

<pallas_src>
import math

import numpy as np
import jax
import jax.numpy as jnp
from jax.experimental import pallas as pl
from jax.experimental.pallas import tpu as pltpu


# Lane-dense padding: hidden width padded to one full 128-lane vreg so every store is
# an unmasked vst and every edge shares one [128, 128] weight-block shape.
H_PAD = 128          # >= max neuron_n over all gene groups


# ----------------------------------------------------------------------------------
# Fused Pallas kernel: 1-D grid over (group, child) edges, features carried in VMEM
# ----------------------------------------------------------------------------------
def make_fused_biovnn(batch, n_groups, gene_slots, n_edges):
    """Feature-slab layout (VMEM scratch, persists across grid steps):
         slot 0 .. gene_slots-1             : gene input columns (128-lane padded)
         slot gene_slots + i (i = group idx): BatchNorm output of group i
    """
    S = gene_slots + n_groups
    B = batch
    inv_b = 1.0 / float(B)

    def kernel(grp_ref, slot_ref, first_ref, last_ref, dst_ref,   # scalar prefetch (SMEM)
               x_ref, w_ref, par_ref,                             # inputs
               state_ref,                                         # output
               slab_ref, acc_ref):                                # VMEM scratch
        step = pl.program_id(0)

        # Very first grid step: load the gene columns into the slab.  Group slots are
        # never read before being written (edge indexing is child-only), so no zero
        # init of the rest of the slab is needed.
        @pl.when(step == 0)
        def _init_genes():
            for s in range(gene_slots):
                slab_ref[s] = x_ref[s]

        # First edge of a group: reset the com_layer accumulator.
        @pl.when(first_ref[step] != 0)
        def _init_acc():
            acc_ref[...] = jnp.zeros_like(acc_ref)

        # --- com_layer (nn.Linear) contribution of this child edge ----------------
        # (the torch.cat gather is pre-folded into the row placement of each block)
        lhs = slab_ref[slot_ref[step]]                    # [B, H_PAD], dynamic slot
        acc_ref[...] += jnp.dot(lhs.astype(jnp.bfloat16), w_ref[0],
                                preferred_element_type=jnp.float32)

        # Last edge of the group: activation, BatchNorm, slab carry, state writeback.
        @pl.when(last_ref[step] != 0)
        def _finalize():
            prm = par_ref[0]                              # [8, H_PAD]: b1, gamma, beta
            z = acc_ref[...] + prm[0:1]

            # Mish: z * tanh(softplus(z)) = z * t(t+2)/(t(t+2)+2),  t = exp(z)
            t = jnp.exp(jnp.minimum(z, 20.0))             # clamp: result is 1.0 in f32
            tt = t * (t + 2.0)
            state = z * (tt / (tt + 2.0))
            state_ref[0] = state                          # == states[i] in the module

            # BatchNorm1d (training-mode batch stats), two-pass centered variance.
            mean = jnp.sum(state, axis=0, keepdims=True) * inv_b
            d = state - mean
            var = jnp.sum(d * d, axis=0, keepdims=True) * inv_b
            bn = d * jax.lax.rsqrt(var + 1e-5) * prm[1:2] + prm[2:3]

            # Carry this group's features in the VMEM slab for downstream groups.
            slab_ref[dst_ref[step]] = bn

    grid_spec = pltpu.PrefetchScalarGridSpec(
        num_scalar_prefetch=5,                   # per-edge grp / slot / first / last / dst
        grid=(n_edges,),
        in_specs=[
            # gene columns: block index never changes -> fetched once
            pl.BlockSpec((gene_slots, B, H_PAD), lambda t, g, s, f, l, d: (0, 0, 0)),
            # edge-packed com_layer weight block for this edge (bf16)
            pl.BlockSpec((1, H_PAD, H_PAD),      lambda t, g, s, f, l, d: (t, 0, 0)),
            # fused b1/gamma/beta slab: block index changes once per group
            pl.BlockSpec((1, 8, H_PAD),          lambda t, g, s, f, l, d: (g[t], 0, 0)),
        ],
        out_specs=pl.BlockSpec((1, B, H_PAD),    lambda t, g, s, f, l, d: (g[t], 0, 0)),
        scratch_shapes=[
            pltpu.VMEM((S, B, H_PAD), jnp.float32),   # feature slab (resident)
            pltpu.VMEM((B, H_PAD), jnp.float32),      # com_layer accumulator
        ],
    )

    # VMEM budget from the actual shapes: resident scratch + double-buffered blocks.
    vmem_bytes = (
        S * B * H_PAD * 4 + B * H_PAD * 4                 # slab + accumulator
        + 2 * gene_slots * B * H_PAD * 4                  # x block (double buffered)
        + 2 * H_PAD * H_PAD * 2                           # bf16 weight block
        + 2 * 8 * H_PAD * 4                               # param slab block
        + 2 * B * H_PAD * 4                               # state output block
    )
    vmem_limit = min(vmem_bytes + (8 << 20), 56 << 20)    # headroom, <64 MiB for v7x

    return pl.pallas_call(
        kernel,
        out_shape=jax.ShapeDtypeStruct((n_groups, B, H_PAD), jnp.float32),  # states
        grid_spec=grid_spec,
        compiler_params=pltpu.CompilerParams(
            # The edge axis is dependency-ordered (each group reads earlier groups'
            # features from the slab), so it must stay sequential ("arbitrary").
            dimension_semantics=("arbitrary",),
            vmem_limit_bytes=vmem_limit,
        ),
    )


# ----------------------------------------------------------------------------------
# Structure builder — mirrors BioVNN._build_layers (topological build over child_map)
# ----------------------------------------------------------------------------------
def build_biovnn_structure(input_dim, child_map, neuron_min=10, neuron_ratio=0.2):
    n_groups = len(child_map)
    out_features = {}
    build_order = []
    total_in = [None] * n_groups
    neuron_n_list = [None] * n_groups
    to_build = list(range(n_groups))
    while to_build:
        progressed = False
        for i in list(to_build):
            j = i + input_dim
            children = child_map[i]
            child_feat = [z for z in children if z < input_dim]
            child_com = [z for z in children if z >= input_dim]
            if any((z - input_dim) not in out_features for z in child_com):
                continue  # a child group is not built yet
            children_n = len(children)
            if j == len(child_map) - 1:          # mirrors the reference code's quirk
                children_n += input_dim
            neuron_n = max(neuron_min, int(children_n * neuron_ratio))
            tin = len(child_feat) + sum(out_features[z - input_dim] for z in child_com)
            out_features[i] = neuron_n
            total_in[i] = tin
            neuron_n_list[i] = neuron_n
            to_build.remove(i)
            build_order.append(i)
            progressed = True
        if not progressed:
            raise ValueError("child_map contains unreachable groups (cycle?)")
    return build_order, total_in, neuron_n_list


def init_params(key, total_in, neuron_n_list, output_dim):
    """Deterministic PyTorch-style Linear init; BN gamma=1, beta=0."""
    params = []
    for tin, h in zip(total_in, neuron_n_list):
        key, k1, k2, k3, k4 = jax.random.split(key, 5)
        b1_bound = 1.0 / math.sqrt(tin)
        b2_bound = 1.0 / math.sqrt(h)
        params.append(dict(
            w1=jax.random.uniform(k1, (tin, h), jnp.float32, -b1_bound, b1_bound),
            b1=jax.random.uniform(k2, (h,), jnp.float32, -b1_bound, b1_bound),
            gamma=jnp.ones((h,), jnp.float32),
            beta=jnp.zeros((h,), jnp.float32),
            w2=jax.random.uniform(k3, (h, output_dim), jnp.float32, -b2_bound, b2_bound),
            b2=jax.random.uniform(k4, (output_dim,), jnp.float32, -b2_bound, b2_bound),
        ))
    return params


# ----------------------------------------------------------------------------------
# Weight packing: one [128, 128] bf16 block per (group, child) edge; the torch.cat
# child gather is folded into zero-padded row placement inside each edge block.
# ----------------------------------------------------------------------------------
def pack_params(params, child_map, build_order, neuron_n_list, input_dim,
                output_dim, gene_slots):
    G = len(child_map)
    assert max(neuron_n_list) <= H_PAD
    assert input_dim <= gene_slots * H_PAD

    grp, slot, first, last, dst = [], [], [], [], []
    wblocks = []
    par = np.zeros((G, 8, H_PAD), np.float32)      # rows: 0=b1, 1=gamma, 2=beta
    w2 = np.zeros((G, H_PAD, output_dim), np.float32)
    b2 = np.zeros((G, output_dim), np.float32)

    for g, i in enumerate(build_order):
        p = params[i]
        H = neuron_n_list[i]
        w1_i = np.asarray(p["w1"], np.float32)     # [Tin_i, H]

        gene_block_by_slot = {}                    # gene children share a slot block
        group_edges = []
        r = 0
        for z in child_map[i]:
            if z < input_dim:                      # gene column -> one weight row
                s = z // H_PAD
                if s not in gene_block_by_slot:
                    gene_block_by_slot[s] = np.zeros((H_PAD, H_PAD), np.float32)
                gene_block_by_slot[s][z % H_PAD, :H] = w1_i[r, :]
                r += 1
            else:                                  # child gene group -> H_c weight rows
                c = z - input_dim
                Hc = neuron_n_list[c]
                blk = np.zeros((H_PAD, H_PAD), np.float32)
                blk[:Hc, :H] = w1_i[r:r + Hc, :]
                group_edges.append((gene_slots + c, blk))
                r += Hc
        assert r == w1_i.shape[0]

        edges = [(s, gene_block_by_slot[s]) for s in sorted(gene_block_by_slot)]
        edges += group_edges
        ne = len(edges)
        assert ne >= 1
        for e, (s, blk) in enumerate(edges):
            grp.append(g)
            slot.append(s)
            first.append(1 if e == 0 else 0)
            last.append(1 if e == ne - 1 else 0)
            dst.append(gene_slots + i)
            wblocks.append(blk)

        par[g, 0, :H] = np.asarray(p["b1"], np.float32)
        par[g, 1, :H] = np.asarray(p["gamma"], np.float32)
        par[g, 2, :H] = np.asarray(p["beta"], np.float32)
        w2[g, :H, :] = np.asarray(p["w2"], np.float32)
        b2[g, :] = np.asarray(p["b2"], np.float32)

    w1e = np.stack(wblocks, axis=0)                # [n_edges, 128, 128]
    return dict(
        grp=jnp.asarray(np.asarray(grp, np.int32)),
        slot=jnp.asarray(np.asarray(slot, np.int32)),
        first=jnp.asarray(np.asarray(first, np.int32)),
        last=jnp.asarray(np.asarray(last, np.int32)),
        dst=jnp.asarray(np.asarray(dst, np.int32)),
        w1e=jnp.asarray(w1e).astype(jnp.bfloat16), # bf16 weights, f32 MXU accumulation
        par=jnp.asarray(par),
        w2=jnp.asarray(w2),
        b2=jnp.asarray(b2),
    )


# ----------------------------------------------------------------------------------
# Forward pass — mirrors BioVNN.forward (returns (pred, states) lists, unpadded)
# ----------------------------------------------------------------------------------
def biovnn_forward(x, fused, packed, build_order, neuron_n_list, input_dim,
                   output_dim, gene_slots):
    B = x.shape[0]
    # Pack gene columns into the lane-dense slab layout [gene_slots, B, H_PAD].
    xf = jnp.pad(x.astype(jnp.float32),
                 ((0, 0), (0, gene_slots * H_PAD - input_dim)))
    x_slab = xf.reshape(B, gene_slots, H_PAD).transpose(1, 0, 2)

    state_pad = fused(packed["grp"], packed["slot"], packed["first"], packed["last"],
                      packed["dst"], x_slab, packed["w1e"], packed["par"])

    # BatchNorm (training-mode batch stats) + output_layer + sigmoid as one small XLA
    # epilogue over the states slab (per review: drops the 64x-padded w2 DMA and the
    # padded pred HBM writeback from the kernel).
    mean = jnp.mean(state_pad, axis=1, keepdims=True)
    var = jnp.mean(jnp.square(state_pad - mean), axis=1, keepdims=True)
    gamma = packed["par"][:, 1:2, :]
    beta = packed["par"][:, 2:3, :]
    bn = (state_pad - mean) * jax.lax.rsqrt(var + 1e-5) * gamma + beta
    logits = jnp.einsum("gbh,gho->gbo", bn, packed["w2"]) + packed["b2"][:, None, :]
    pred_pad = jax.nn.sigmoid(logits)

    G = len(build_order)
    pred = [None] * G
    states = [None] * G
    for g, i in enumerate(build_order):
        states[i] = state_pad[g, :, :neuron_n_list[i]]
        pred[i] = pred_pad[g]
    return pred, states


if __name__ == "__main__":
    # Small synthetic BioVNN hierarchy
    input_dim = 8      # number of gene input features
    output_dim = 2
    batch = 8          # multiple of 8 -> full sublane tiles
    # child indices < input_dim are genes, >= input_dim are previously-built groups
    child_map = [
        [0, 1, 2, 3],        # group j=8  : 4 genes
        [4, 5, 6, 7],        # group j=9  : 4 genes
        [2, 3, 8],           # group j=10 : 2 genes + group 8
        [0, 9, 10],          # group j=11 : 1 gene + groups 9,10 (root)
    ]

    build_order, total_in, neuron_n_list = build_biovnn_structure(
        input_dim, child_map, neuron_min=10, neuron_ratio=0.2)

    key = jax.random.PRNGKey(0)
    key_x, key_p = jax.random.split(key)
    x = jax.random.normal(key_x, (batch, input_dim), dtype=jnp.float32)
    params = init_params(key_p, total_in, neuron_n_list, output_dim)

    gene_slots = -(-input_dim // H_PAD)
    packed = pack_params(params, child_map, build_order, neuron_n_list,
                         input_dim, output_dim, gene_slots)
    n_edges = int(packed["grp"].shape[0])
    fused = make_fused_biovnn(batch, len(child_map), gene_slots, n_edges)

    fwd = jax.jit(lambda xx, pk: biovnn_forward(
        xx, fused, pk, build_order, neuron_n_list, input_dim, output_dim, gene_slots))

    pred, states = fwd(x, packed)
    jax.block_until_ready((pred, states))

    assert all(p.shape == (batch, output_dim) for p in pred)
    assert all(s.shape == (batch, h) for s, h in zip(states, neuron_n_list))
    assert all(bool(jnp.all(jnp.isfinite(p))) for p in pred)
    assert all(bool(jnp.all(jnp.isfinite(s))) for s in states)
    print("KERNEL_OK")
</pallas_src>

<mosaic_0001>
module attributes {stable_mosaic.version = 11 : i64} {
  func.func @kernel(%arg0: i32, %arg1: memref<7xi32, #tpu.memory_space<smem>>, %arg2: memref<7xi32, #tpu.memory_space<smem>>, %arg3: memref<7xi32, #tpu.memory_space<smem>>, %arg4: memref<7xi32, #tpu.memory_space<smem>>, %arg5: memref<7xi32, #tpu.memory_space<smem>>, %arg6: memref<1x8x128xf32, #tpu.memory_space<vmem>>, %arg7: memref<1x128x128xbf16, #tpu.memory_space<vmem>>, %arg8: memref<1x8x128xf32, #tpu.memory_space<vmem>>, %arg9: memref<1x8x128xf32, #tpu.memory_space<vmem>>, %arg10: memref<5x8x128xf32, #tpu.memory_space<vmem>>, %arg11: memref<8x128xf32, #tpu.memory_space<vmem>>) attributes {dimension_semantics = [#tpu.dimension_semantics<arbitrary>], iteration_bounds = array<i64: 7>, scalar_prefetch = 5 : i64, scratch_operands = 2 : i64, tpu.core_type = #tpu.core_type<tc>, window_params = [{pipeline_mode = #tpu.pipeline_mode<synchronous>, transform_indices = @transform_0, window_bounds = array<i64: 1, 8, 128>}, {transform_indices = @transform_1, window_bounds = array<i64: 1, 128, 128>}, {transform_indices = @transform_2, window_bounds = array<i64: 1, 8, 128>}, {transform_indices = @transform_3, window_bounds = array<i64: 1, 8, 128>}]} {
    %c0_i32 = arith.constant 0 : i32
    %0 = arith.cmpi eq, %arg0, %c0_i32 : i32
    %1 = arith.extui %0 : i1 to i32
    %c0_i32_0 = arith.constant 0 : i32
    %2 = arith.cmpi ne, %1, %c0_i32_0 : i32
    scf.if %2 {
      %c0_13 = arith.constant 0 : index
      %c0_14 = arith.constant 0 : index
      %c0_15 = arith.constant 0 : index
      %25 = vector.load %arg6[%c0_13, %c0_14, %c0_15] : memref<1x8x128xf32, #tpu.memory_space<vmem>>, vector<1x8x128xf32>
      %26 = vector.shape_cast %25 : vector<1x8x128xf32> to vector<8x128xf32>
      %c0_16 = arith.constant 0 : index
      %c0_17 = arith.constant 0 : index
      %c0_18 = arith.constant 0 : index
      %27 = vector.load %arg10[%c0_16, %c0_17, %c0_18] : memref<5x8x128xf32, #tpu.memory_space<vmem>>, vector<1x8x128xf32>
      %28 = vector.shape_cast %27 : vector<1x8x128xf32> to vector<8x128xf32>
      %29 = vector.shape_cast %26 : vector<8x128xf32> to vector<1x8x128xf32>
      tpu.vector_store %arg10[%c0_16, %c0_17, %c0_18], %29 {strides = array<i32>} : memref<5x8x128xf32, #tpu.memory_space<vmem>>, vector<1x8x128xf32>,
    } else {
    }
    %3 = arith.index_cast %arg0 : i32 to index
    %4 = memref.load %arg3[%3] : memref<7xi32, #tpu.memory_space<smem>>
    %c0_i32_1 = arith.constant 0 : i32
    %5 = arith.cmpi ne, %4, %c0_i32_1 : i32
    %6 = arith.extui %5 : i1 to i32
    %c0_i32_2 = arith.constant 0 : i32
    %7 = arith.cmpi ne, %6, %c0_i32_2 : i32
    scf.if %7 {
      %cst_13 = arith.constant 0.000000e+00 : f32
      %25 = vector.broadcast %cst_13 : f32 to vector<8x128xf32>
      %c0_14 = arith.constant 0 : index
      %c0_15 = arith.constant 0 : index
      %26 = vector.load %arg11[%c0_14, %c0_15] : memref<8x128xf32, #tpu.memory_space<vmem>>, vector<8x128xf32>
      tpu.vector_store %arg11[%c0_14, %c0_15], %25 {strides = array<i32>} : memref<8x128xf32, #tpu.memory_space<vmem>>, vector<8x128xf32>,
    } else {
    }
    %8 = arith.index_cast %arg0 : i32 to index
    %9 = memref.load %arg2[%8] : memref<7xi32, #tpu.memory_space<smem>>
    %10 = arith.index_cast %9 : i32 to index
    %c0 = arith.constant 0 : index
    %c0_3 = arith.constant 0 : index
    %11 = vector.load %arg10[%10, %c0, %c0_3] : memref<5x8x128xf32, #tpu.memory_space<vmem>>, vector<1x8x128xf32>
    %12 = vector.shape_cast %11 : vector<1x8x128xf32> to vector<8x128xf32>
    %c0_4 = arith.constant 0 : index
    %c0_5 = arith.constant 0 : index
    %13 = vector.load %arg11[%c0_4, %c0_5] : memref<8x128xf32, #tpu.memory_space<vmem>>, vector<8x128xf32>
    %14 = arith.truncf %12 : vector<8x128xf32> to vector<8x128xbf16>
    %c0_6 = arith.constant 0 : index
    %c0_7 = arith.constant 0 : index
    %c0_8 = arith.constant 0 : index
    %15 = vector.load %arg7[%c0_6, %c0_7, %c0_8] : memref<1x128x128xbf16, #tpu.memory_space<vmem>>, vector<1x128x128xbf16>
    %16 = vector.shape_cast %15 : vector<1x128x128xbf16> to vector<128x128xbf16>
    %cst = arith.constant dense<0.000000e+00> : vector<8x128xf32>
    %17 = tpu.matmul %14, %16, %cst {dimension_numbers = #tpu.dot_dimension_numbers<[1], [0], [0], [1], [0, 0, 1, 1], [], []>} : vector<8x128xbf16>, vector<128x128xbf16>, vector<8x128xf32> -> vector<8x128xf32>
    %18 = arith.addf %13, %17 : vector<8x128xf32>
    %c0_9 = arith.constant 0 : index
    %c0_10 = arith.constant 0 : index
    %19 = vector.load %arg11[%c0_9, %c0_10] : memref<8x128xf32, #tpu.memory_space<vmem>>, vector<8x128xf32>
    tpu.vector_store %arg11[%c0_9, %c0_10], %18 {strides = array<i32>} : memref<8x128xf32, #tpu.memory_space<vmem>>, vector<8x128xf32>,
    %20 = arith.index_cast %arg0 : i32 to index
    %21 = memref.load %arg4[%20] : memref<7xi32, #tpu.memory_space<smem>>
    %c0_i32_11 = arith.constant 0 : i32
    %22 = arith.cmpi ne, %21, %c0_i32_11 : i32
    %23 = arith.extui %22 : i1 to i32
    %c0_i32_12 = arith.constant 0 : i32
    %24 = arith.cmpi ne, %23, %c0_i32_12 : i32
    scf.if %24 {
      %c0_13 = arith.constant 0 : index
      %c0_14 = arith.constant 0 : index
      %c0_15 = arith.constant 0 : index
      %25 = vector.load %arg8[%c0_13, %c0_14, %c0_15] : memref<1x8x128xf32, #tpu.memory_space<vmem>>, vector<1x8x128xf32>
      %26 = vector.shape_cast %25 : vector<1x8x128xf32> to vector<8x128xf32>
      %c0_16 = arith.constant 0 : index
      %c0_17 = arith.constant 0 : index
      %27 = vector.load %arg11[%c0_16, %c0_17] : memref<8x128xf32, #tpu.memory_space<vmem>>, vector<8x128xf32>
      %28 = vector.extract_strided_slice %26 {offsets = [0, 0], sizes = [1, 128], strides = [1, 1]} : vector<8x128xf32> to vector<1x128xf32>
      %29 = vector.broadcast %28 : vector<1x128xf32> to vector<8x128xf32>
      %30 = arith.addf %27, %29 : vector<8x128xf32>
      %cst_18 = arith.constant 2.000000e+01 : f32
      %31 = vector.broadcast %cst_18 : f32 to vector<8x128xf32>
      %32 = arith.minimumf %30, %31 : vector<8x128xf32>
      %33 = math.exp %32 : vector<8x128xf32>
      %cst_19 = arith.constant 2.000000e+00 : f32
      %34 = vector.broadcast %cst_19 : f32 to vector<8x128xf32>
      %35 = arith.addf %33, %34 : vector<8x128xf32>
      %36 = arith.mulf %33, %35 : vector<8x128xf32>
      %cst_20 = arith.constant 2.000000e+00 : f32
      %37 = vector.broadcast %cst_20 : f32 to vector<8x128xf32>
      %38 = arith.addf %36, %37 : vector<8x128xf32>
      %39 = arith.divf %36, %38 : vector<8x128xf32>
      %40 = arith.mulf %30, %39 : vector<8x128xf32>
      %c0_21 = arith.constant 0 : index
      %c0_22 = arith.constant 0 : index
      %c0_23 = arith.constant 0 : index
      %41 = vector.load %arg9[%c0_21, %c0_22, %c0_23] : memref<1x8x128xf32, #tpu.memory_space<vmem>>, vector<1x8x128xf32>
      %42 = vector.shape_cast %41 : vector<1x8x128xf32> to vector<8x128xf32>
      %43 = vector.shape_cast %40 : vector<8x128xf32> to vector<1x8x128xf32>
      tpu.vector_store %arg9[%c0_21, %c0_22, %c0_23], %43 {strides = array<i32>} : memref<1x8x128xf32, #tpu.memory_space<vmem>>, vector<1x8x128xf32>,
      %cst_24 = arith.constant dense<0.000000e+00> : vector<128xf32>
      %44 = vector.multi_reduction <add>, %40, %cst_24 [0] : vector<8x128xf32> to vector<128xf32>
      %45 = vector.shape_cast %44 : vector<128xf32> to vector<1x128xf32>
      %cst_25 = arith.constant 1.250000e-01 : f32
      %46 = vector.broadcast %cst_25 : f32 to vector<1x128xf32>
      %47 = arith.mulf %45, %46 : vector<1x128xf32>
      %48 = vector.broadcast %47 : vector<1x128xf32> to vector<8x128xf32>
      %49 = arith.subf %40, %48 : vector<8x128xf32>
      %50 = arith.mulf %49, %49 : vector<8x128xf32>
      %cst_26 = arith.constant dense<0.000000e+00> : vector<128xf32>
      %51 = vector.multi_reduction <add>, %50, %cst_26 [0] : vector<8x128xf32> to vector<128xf32>
      %52 = vector.shape_cast %51 : vector<128xf32> to vector<1x128xf32>
      %cst_27 = arith.constant 1.250000e-01 : f32
      %53 = vector.broadcast %cst_27 : f32 to vector<1x128xf32>
      %54 = arith.mulf %52, %53 : vector<1x128xf32>
      %cst_28 = arith.constant 9.99999974E-6 : f32
      %55 = vector.broadcast %cst_28 : f32 to vector<1x128xf32>
      %56 = arith.addf %54, %55 : vector<1x128xf32>
      %57 = math.rsqrt %56 : vector<1x128xf32>
      %58 = vector.broadcast %57 : vector<1x128xf32> to vector<8x128xf32>
      %59 = arith.mulf %49, %58 : vector<8x128xf32>
      %60 = vector.extract_strided_slice %26 {offsets = [1, 0], sizes = [1, 128], strides = [1, 1]} : vector<8x128xf32> to vector<1x128xf32>
      %61 = vector.broadcast %60 : vector<1x128xf32> to vector<8x128xf32>
      %62 = arith.mulf %59, %61 : vector<8x128xf32>
      %63 = vector.extract_strided_slice %26 {offsets = [2, 0], sizes = [1, 128], strides = [1, 1]} : vector<8x128xf32> to vector<1x128xf32>
      %64 = vector.broadcast %63 : vector<1x128xf32> to vector<8x128xf32>
      %65 = arith.addf %62, %64 : vector<8x128xf32>
      %66 = arith.index_cast %arg0 : i32 to index
      %67 = memref.load %arg5[%66] : memref<7xi32, #tpu.memory_space<smem>>
      %68 = arith.index_cast %67 : i32 to index
      %c0_29 = arith.constant 0 : index
      %c0_30 = arith.constant 0 : index
      %69 = vector.load %arg10[%68, %c0_29, %c0_30] : memref<5x8x128xf32, #tpu.memory_space<vmem>>, vector<1x8x128xf32>
      %70 = vector.shape_cast %69 : vector<1x8x128xf32> to vector<8x128xf32>
      %71 = vector.shape_cast %65 : vector<8x128xf32> to vector<1x8x128xf32>
      tpu.vector_store %arg10[%68, %c0_29, %c0_30], %71 {strides = array<i32>} : memref<5x8x128xf32, #tpu.memory_space<vmem>>, vector<1x8x128xf32>,
    } else {
    }
    return
  }
  func.func @transform_0(%arg0: i32, %arg1: memref<7xi32, #tpu.memory_space<smem>>, %arg2: memref<7xi32, #tpu.memory_space<smem>>, %arg3: memref<7xi32, #tpu.memory_space<smem>>, %arg4: memref<7xi32, #tpu.memory_space<smem>>, %arg5: memref<7xi32, #tpu.memory_space<smem>>) -> (i32, i32, i32) {
    %c0_i32 = arith.constant 0 : i32
    %c0_i32_0 = arith.constant 0 : i32
    %c0_i32_1 = arith.constant 0 : i32
    %c0_i32_2 = arith.constant 0 : i32
    return %c0_i32, %c0_i32_0, %c0_i32_1 : i32, i32, i32
  }
  func.func @transform_1(%arg0: i32, %arg1: memref<7xi32, #tpu.memory_space<smem>>, %arg2: memref<7xi32, #tpu.memory_space<smem>>, %arg3: memref<7xi32, #tpu.memory_space<smem>>, %arg4: memref<7xi32, #tpu.memory_space<smem>>, %arg5: memref<7xi32, #tpu.memory_space<smem>>) -> (i32, i32, i32) {
    %c0_i32 = arith.constant 0 : i32
    %c0_i32_0 = arith.constant 0 : i32
    %c0_i32_1 = arith.constant 0 : i32
    return %arg0, %c0_i32, %c0_i32_0 : i32, i32, i32
  }
  func.func @transform_2(%arg0: i32, %arg1: memref<7xi32, #tpu.memory_space<smem>>, %arg2: memref<7xi32, #tpu.memory_space<smem>>, %arg3: memref<7xi32, #tpu.memory_space<smem>>, %arg4: memref<7xi32, #tpu.memory_space<smem>>, %arg5: memref<7xi32, #tpu.memory_space<smem>>) -> (i32, i32, i32) {
    %0 = arith.index_cast %arg0 : i32 to index
    %1 = memref.load %arg1[%0] : memref<7xi32, #tpu.memory_space<smem>>
    %c0_i32 = arith.constant 0 : i32
    %c0_i32_0 = arith.constant 0 : i32
    %c0_i32_1 = arith.constant 0 : i32
    return %1, %c0_i32, %c0_i32_0 : i32, i32, i32
  }
  func.func @transform_3(%arg0: i32, %arg1: memref<7xi32, #tpu.memory_space<smem>>, %arg2: memref<7xi32, #tpu.memory_space<smem>>, %arg3: memref<7xi32, #tpu.memory_space<smem>>, %arg4: memref<7xi32, #tpu.memory_space<smem>>, %arg5: memref<7xi32, #tpu.memory_space<smem>>) -> (i32, i32, i32) {
    %0 = arith.index_cast %arg0 : i32 to index
    %1 = memref.load %arg1[%0] : memref<7xi32, #tpu.memory_space<smem>>
    %c0_i32 = arith.constant 0 : i32
    %c0_i32_0 = arith.constant 0 : i32
    %c0_i32_1 = arith.constant 0 : i32
    return %1, %c0_i32, %c0_i32_0 : i32, i32, i32
  }
}

</mosaic_0001>

<bundles_post_ra>
// kernel: _lambda_.1
= control target key start
LH: loop header
LB: loop body
LE: loop exit
PB: predicated region body
PF: predicated region fallthrough
CT: control target
= control target key end

     0   :  { %s961_s0 = inlined_call_operand.vmem [shape: s32[7], index: 0, kind: input, shape index: {}]   ;;  %s962_s5 = inlined_call_operand.vmem [shape: f32[1,8,128], index: 5, kind: input, shape index: {}]   ;;  %s963_s6 = inlined_call_operand.hbm [shape: bf16[7,128,128], index: 6, kind: input, shape index: {}]   ;;  %s964_s7 = inlined_call_operand.vmem [shape: f32[4,8,128], index: 7, kind: input, shape index: {}]   ;;  %s965_s8 = inlined_call_operand.vmem [shape: f32[4,8,128], index: 8, kind: output, shape index: {}]   ;;  %s966_s1 = inlined_call_operand.vmem [shape: s32[7], index: 1, kind: input, shape index: {}]   ;;  %s967_s2 = inlined_call_operand.vmem [shape: s32[7], index: 2, kind: input, shape index: {}]   ;;  %s968_s3 = inlined_call_operand.vmem [shape: s32[7], index: 3, kind: input, shape index: {}]   ;;  %s969_s4 = inlined_call_operand.vmem [shape: s32[7], index: 4, kind: input, shape index: {}]  }
   0x1   :  { %s13_s29 = sshll.u32 %s961_s0, 4  ;;  %s17_s10 = sshll.u32 %s966_s1, 4  ;;  %s14_s29 = int_to_ptr.vmem [resolvable:$true] %s13_s29  ;;  %s18_s10 = int_to_ptr.vmem [resolvable:$true] %s17_s10 }
   0x2   :  { %s627_s11 = scalar_lea.vmem %s14_s29, 16  ;;  %p632_p1 = scmp.lt.s32.totalorder %s14_s29, %s14_s29 }
   0x3   :  { %p628_p0 = scmp.ne.s32.totalorder %s14_s29, %s627_s11  ;;  %p633_p2 = scmp.lt.s32.totalorder %s627_s11, %s627_s11 }
   0x5   :  { %p634_p3 = por %p633_p2, %p632_p1 }
   0x7   :  { %p635_p4 = pnand %p634_p3, %p628_p0 }
   0x9   :  { %638 = shalt.err (!%p635_p4)  }
   0xa   :  { %s755_s12 = smov [#allocation5]   ;;  %s639_s13 = scalar_lea.vmem %s18_s10, 16 }
   0xb   :  { %16 = dma.vmem_to_smem %s14_s29, 16, %s755_s12, [#allocation4] }
   0xc   :  { %p640_p5 = scmp.ne.s32.totalorder %s18_s10, %s639_s13  ;;  %p644_p6 = scmp.lt.s32.totalorder %s18_s10, %s18_s10 }
   0xd   :  { %p645_p7 = scmp.lt.s32.totalorder %s639_s13, %s639_s13 }
   0xf   :  { %p646_p8 = por %p645_p7, %p644_p6 }
  0x11   :  { %p647_p9 = pnand %p646_p8, %p640_p5 }
  0x13   :  { %650 = shalt.err (!%p647_p9)  }
  0x14   :  { %s756_s0 = smov [#allocation6]   ;;  %s21_s15 = sshll.u32 %s967_s2, 4  ;;  %s22_s15 = int_to_ptr.vmem [resolvable:$true] %s21_s15 }
  0x15   :  { %20 = dma.vmem_to_smem %s18_s10, 16, %s756_s0, [#allocation4] }
  0x16   :  { %s25_s18 = sshll.u32 %s968_s3, 4  ;;  %s651_s19 = scalar_lea.vmem %s22_s15, 16  ;;  %s26_s18 = int_to_ptr.vmem [resolvable:$true] %s25_s18 }
  0x17   :  { %p652_p10 = scmp.ne.s32.totalorder %s22_s15, %s651_s19  ;;  %p656_p11 = scmp.lt.s32.totalorder %s22_s15, %s22_s15 }
  0x18   :  { %p657_p12 = scmp.lt.s32.totalorder %s651_s19, %s651_s19 }
  0x1a   :  { %p658_p13 = por %p657_p12, %p656_p11 }
  0x1c   :  { %p659_p0 = pnand %p658_p13, %p652_p10 }
  0x1e   :  { %662 = shalt.err (!%p659_p0)  }
  0x1f   :  { %s757_s20 = smov [#allocation7]   ;;  %s663_s21 = scalar_lea.vmem %s26_s18, 16 }
  0x20   :  { %24 = dma.vmem_to_smem %s22_s15, 16, %s757_s20, [#allocation4] }
  0x21   :  { %p664_p1 = scmp.ne.s32.totalorder %s26_s18, %s663_s21  ;;  %p668_p2 = scmp.lt.s32.totalorder %s26_s18, %s26_s18 }
  0x22   :  { %p669_p3 = scmp.lt.s32.totalorder %s663_s21, %s663_s21 }
  0x24   :  { %p670_p4 = por %p669_p3, %p668_p2 }
  0x26   :  { %p671_p5 = pnand %p670_p4, %p664_p1 }
  0x28   :  { %674 = shalt.err (!%p671_p5)  }
  0x29   :  { %s758_s2 = smov [#allocation8]   ;;  %s29_s23 = sshll.u32 %s969_s4, 4  ;;  %s30_s23 = int_to_ptr.vmem [resolvable:$true] %s29_s23 }
  0x2a   :  { %28 = dma.vmem_to_smem %s26_s18, 16, %s758_s2, [#allocation4] }
  0x2b   :  { %s675_s24 = scalar_lea.vmem %s30_s23, 16  ;;  %p680_p7 = scmp.lt.s32.totalorder %s30_s23, %s30_s23 }
  0x2c   :  { %p676_p6 = scmp.ne.s32.totalorder %s30_s23, %s675_s24  ;;  %p681_p8 = scmp.lt.s32.totalorder %s675_s24, %s675_s24 }
  0x2e   :  { %p682_p9 = por %p681_p8, %p680_p7 }
  0x30   :  { %p683_p10 = pnand %p682_p9, %p676_p6 }
  0x32   :  { %686 = shalt.err (!%p683_p10)  }
  0x33   :  { %s759_s25 = smov [#allocation9]  }
  0x34   :  { %32 = dma.vmem_to_smem %s30_s23, 16, %s759_s25, [#allocation4] }
  0x35   :  { %733 = dma.done.wait [#allocation4], 80 }
  0x36   :  { %734 = vsyncadd [#allocation4], 4294967216 }
  0x37   :  { %34 = sfence }
  0x38   :  { %35 = vsyncpa [#allocation11], 0 }
  0x39   :  { %37 = vsyncpa [#allocation11 + $0x1], 0  ;;  %s826_s26 = smov 0   ;;  %s828_s27 = smov 0  }
  0x3a   :  { %s830_s4 = smov 0   ;;  %s832_s28 = smov 0  }
  0x3b LB: > { %s845_s29 = sadd.s32 4294967295, %s753_s28   ;;  %s848_s30 = sadd.s32 1, %s753_s28   ;;  %s753_s28 = sphi %s832_s28, %s976_s28   ;;  %s749_s4 = sphi %s830_s4, %s975_s4   ;;  %s745_s27 = sphi %s828_s27, %s974_s27   ;;  %s741_s26 = sphi %s826_s26, %s973_s26  }
  0x3c   : > { %s68_s9 = ssub.s32 %s753_s28, %s848_s30  ;;  %s71_s10 = sadd.s32 1, %s749_s4 }
  0x3d   : > { %p69_p11 = scmp.eq.s32.totalorder %s68_s9, 0  ;;  %p78_p12 = scmp.ne.s32.totalorder %s749_s4, %s745_s27 }
  0x3e   : > { %p79_p13 = scmp.eq.s32.totalorder %s753_s28, 0  ;;  %p84_p0 = scmp.ne.s32.totalorder %s745_s27, %s741_s26 }
  0x3f   : > { %s858_s11 = scalar_select %p69_p11, %s749_s4, %s71_s10  }
  0x40   : > { %p80_p1 = por %p79_p13, %p78_p12  ;;  %p85_p2 = scmp.eq.s32.totalorder %s845_s29, 0 }
  0x41   : > { %p570_p3 = scmp.lt.s32.totalorder %s753_s28, 7  ;;  %s167_s13 = sand.u32 1, %s749_s4  }
  0x42   : > { %p862_p4 = por %p85_p2, %p84_p0  ;;  %s512_s0 = sshll.u32 %s167_s13, 6 }
  0x43   : > { %s534_s1 = sshll.u32 %s753_s28, 10  ;;  %s171_s17 = scalar_lea.vmem [#allocation10], %s512_s0 }
  0x44   : > { %s871_s16 = scalar_lea.hbm %s963_s6, %s534_s1  ;;  %s178_s18 = sshll.u32 %s171_s17, 4  ;;  %s873_s18 = int_to_ptr.vmem [resolvable:$true] %s178_s18 }
  0x45   : > { %p875_p5 = pnand %p570_p3, %p80_p1  ;;  %s880_s20 = scalar_lea.sflag [#allocation11], %s167_s13 }
  0x46   : > { %s687_s21 = scalar_lea.hbm %s871_s16, 1024  ;;  %s692_s22 = scalar_lea.hbm %s963_s6, 7168 }
  0x47   : > { %p688_p7 = scmp.ne.s32.totalorder %s871_s16, %s687_s21  ;;  %p689_p8 = pneg %p875_p5 }
  0x48   : > { %p693_p11 = scmp.lt.u32.totalorder %s871_s16, %s963_s6  ;;  %p694_p12 = scmp.lt.u32.totalorder %s692_s22, %s687_s21 }
  0x49   : > { %p690_p9 = pnand %p689_p8, %p688_p7  ;;  %p696_p0 = scmp.lt.u32.totalorder %s687_s21, %s871_s16 }
  0x4a   : > { %p695_p13 = por %p694_p12, %p693_p11 }
  0x4b   : > { %p691_p10 = pneg %p690_p9 }
  0x4c   : > { %p697_p1 = por %p696_p0, %p695_p13 }
  0x4e   : > { %p698_p2 = pnand %p697_p1, %p691_p10 }
  0x50   : > { %701 = shalt.err (!%p698_p2)
}
  0x51   : > { %s702_s25 = scalar_lea.vmem %s873_s18, 1024  ;;  %s760_s26 = smov [#allocation10]  }
  0x52   : > { %p703_p3 = scmp.ne.s32.totalorder %s873_s18, %s702_s25  ;;  %s707_s9 = sshll.u32 %s760_s26, 4  ;;  %s708_s9 = int_to_ptr.vmem [resolvable:$false] %s707_s9 }
  0x53   : > { %s709_s10 = scalar_lea.vmem %s708_s9, 2048  ;;  %p710_p6 = scmp.lt.s32.totalorder %s873_s18, %s708_s9 }
  0x54   : > { %p705_p7 = pnand %p703_p3, %p689_p8  ;;  %p711_p11 = scmp.lt.s32.totalorder %s709_s10, %s702_s25 }
  0x56   : > { %p706_p9 = pneg %p705_p7  ;;  %p712_p12 = por %p711_p11, %p710_p6 }
  0x58   : > { %p713_p13 = pnand %p712_p12, %p706_p9 }
  0x5a   : > { %716 = shalt.err (!%p713_p13)
}
  0x5b   : > { %s761_s13 = smov 64   ;;  %s762_s0 = smov 4  }
  0x5c   : > { %569 = dma.hbm_to_vmem [thread:$0]  (!%p875_p5), %s871_s16, 1024, %s873_s18, %s880_s20, %s761_s13, %s761_s13, %s762_s0  }
  0x5d   : > { %p195_p8 = scmp.lt.s32.totalorder %s753_s28, 8  ;;  %p972_p10 = scmp.ge.s32.totalorder %s753_s28, 1 }
  0x5f   : > { %p196_p0 = pnand %p972_p10, %p195_p8 }
  0x60   : > { %s201_s1 = sand.u32 (!%p196_p0), 1, %s745_s27  }
  0x61   : > { %199 = sbr.rel (%p196_p0) target bundleno = 477 (0x1dd), region = 32  ;;  %s516_s14 = sshll.u32 (!%p196_p0), %s201_s1, 6 }
  0x62   : > { %s202_s15 = scalar_lea.sflag (!%p196_p0), [#allocation11], %s201_s1  ;;  %s912_s17 = scalar_lea.vmem (!%p196_p0), [#allocation10], %s516_s14 }
  0x68   : > { %736 = dma.done.wait (%p862_p4), %s202_s15, 1024  }
  0x69   : > { %738 = vsyncadd (%p862_p4), %s202_s15, 4294966272  ;;  %s233_s19 = sld [smem:[#allocation5 + %s845_s29]]  ;;  %p519_p4 = scmp.ne.s32.totalorder %s845_s29, 0 }
  0x6a   : > { %s239_s16 = sld [smem:[#allocation5 + %s845_s29]]  ;;  %v250_v0 = vld [vmem:[%s962_s5] sm:$0xff] (!%p519_p4) }
  0x6b   : > { %251 = vst [vmem:[#allocation2] sm:$0xff] (!%p519_p4), %v250_v0 }
  0x6e   : > { %249 = sbr.rel (%p519_p4) target bundleno = 117 (0x75), region = 40 }
  0x6f   : > { %p234_p5 = scmp.lt.s32.totalorder %s233_s19, 3 }
  0x70   : > { %p240_p6 = scmp.lt.s32.totalorder %s239_s16, 3 }
  0x71   : > { %s978_s19 = smov (!%p234_p5, %s233_s19), 3 }
  0x72   : > { %s980_s16 = smov (!%p240_p6, %s239_s16), 3  ;;  %s517_s28 = sshll.u32 %s978_s19, 3 }
  0x73   : > { %s923_s21 = scalar_lea.vmem %s964_s7, %s517_s28  ;;  %s518_s2 = sshll.u32 %s980_s16, 3 }
  0x74   : > { %s928_s12 = scalar_lea.vmem %s965_s8, %s518_s2 }
  0x75 PF: > { %s252_s25 = sld [smem:[#allocation7 + %s845_s29]] }
  0x7b   : > { %p520_p1 = scmp.eq.s32.totalorder %s252_s25, 0 }
  0x7c   : > { %v763_v1 = vmov (!%p520_p1), 0.0  }
  0x7d   : > { %256 = sbr.rel (%p520_p1) target bundleno = 132 (0x84), region = 44  ;;  %257 = vst [vmem:[#allocation3] sm:$0xff] (!%p520_p1), %v763_v1 }
  0x84 PF: > { %v613_v2 = vld [vmem:[%s912_s17] sm:$0xff]   ;;  %v764_v3 = vmov 0.0   ;;  %v614_v4 = vld [vmem:[%s912_s17 + $0x8] sm:$0xff]   ;;  %vm765_vm0 = vmmov 0   ;;  %v615_v5 = vld [vmem:[%s912_s17 + $0x10] sm:$0xff]   ;;  %s258_s26 = sld [smem:[#allocation6 + %s845_s29]] }
  0x85   : > { %544 = vmatprep.subr.bf16.mxu0 %v764_v3  ;;  %560 = vmatprep.mubr.msk.bf16.mxu0 %vm765_vm0, %v764_v3  ;;  %v616_v6 = vld [vmem:[%s912_s17 + $0x18] sm:$0xff]   ;;  %v617_v7 = vld [vmem:[%s912_s17 + $0x20] sm:$0xff]   ;;  %v618_v8 = vld [vmem:[%s912_s17 + $0x28] sm:$0xff]   ;;  %s370_s13 = sld [smem:[#allocation8 + %s845_s29]] }
  0x86   : > { %545 = vmatpush3.bf16.msra.mxu0 %v613_v2  ;;  %v619_v9 = vld [vmem:[%s912_s17 + $0x30] sm:$0xff]   ;;  %v620_v10 = vld [vmem:[%s912_s17 + $0x38] sm:$0xff]  }
  0x87   : > { %546 = vmatprep.subr.bf16.mxu0 %v764_v3  ;;  %v262_v13 = vld [vmem:[#allocation3] sm:$0xff] }
  0x8a   : > { %547 = vmatpush3.bf16.msra.mxu0 %v614_v4  ;;  %s521_s9 = sshll.u32 %s258_s26, 3 }
  0x8b   : > { %548 = vmatprep.subr.bf16.mxu0 %v764_v3  ;;  %s260_s10 = scalar_lea.vmem [#allocation2], %s521_s9  ;;  %p530_p2 = scmp.eq.s32.totalorder %s370_s13, 0 }
  0x8c   : > { %v261_v11 = vld [vmem:[%s260_s10] sm:$0xff]  ;;  %v377_v19 = vlaneseq (!%p530_p2)  ;;  %s421_s0 = sld [smem:[#allocation9 + %s845_s29]] (!%p530_p2) }
  0x8d   : > { %v263_v12 = vpack.c.bf16 %v261_v11, %v261_v11  ;;  %v375_v21 = vld [vmem:[%s923_s21] sm:$0xff] (!%p530_p2) }
  0x8e   : > { %549 = vmatpush3.bf16.msra.mxu0 %v615_v5  ;;  %v378_v20 = vshrl.u32 (!%p530_p2), %v377_v19, 7 }
  0x8f   : > { %550 = vmatprep.subr.bf16.mxu0 %v764_v3 }
  0x90   : > { %v379_v22 = vsub.s32 (!%p530_p2), 0, %v378_v20  ;;  %v413_v23 = vsub.s32 (!%p530_p2), 1, %v378_v20  ;;  %v418_v24 = vsub.s32 (!%p530_p2), 2, %v378_v20 }
  0x92   : > { %551 = vmatpush3.bf16.msra.mxu0 %v616_v6  ;;  %v380_v26 = vrot.slane (!%p530_p2), %v375_v21, %v379_v22  ;;  %v414_v27 = vrot.slane (!%p530_p2), %v375_v21, %v413_v23  ;;  %v419_v28 = vrot.slane (!%p530_p2), %v375_v21, %v418_v24  ;;  %s531_s1 = sshll.u32 (!%p530_p2), %s421_s0, 3 }
  0x93   : > { %552 = vmatprep.subr.bf16.mxu0 %v764_v3  ;;  %s423_s14 = scalar_lea.vmem (!%p530_p2), [#allocation2], %s531_s1 }
  0x96   : > { %553 = vmatpush3.bf16.msra.mxu0 %v617_v7 }
  0x97   : > { %554 = vmatprep.subr.bf16.mxu0 %v764_v3 }
  0x9a   : > { %555 = vmatpush3.bf16.msra.mxu0 %v618_v8 }
  0x9b   : > { %556 = vmatprep.subr.bf16.mxu0 %v764_v3 }
  0x9e   : > { %557 = vmatpush3.bf16.msra.mxu0 %v619_v9 }
  0x9f   : > { %558 = vmatprep.subr.bf16.mxu0 %v764_v3 }
  0xa2   : > { %559 = vmatpush3.bf16.msra.mxu0 %v620_v10 }
  0xa5   : > { %561 = vmatmul.mubr.bf16.vlgmr.msra.gmra.mrb[0].mxu0 %v263_v12 }
 0x175   : > { %374 = sbr.rel (%p530_p2) target bundleno = 477 (0x1dd), region = 48 }
 0x178   : > { %v362_v14 = vpop.f32.mrb[0].mxu0 }
 0x179   : > { %v368_v15 = vadd.f32 %v362_v14, %v262_v13  ;;  %v562_v16 = vpop.f32.mrb[1].mxu0 }
 0x17a   : > { %v365_v17 = vpop.f32.mrb[2].mxu0 }
 0x17b   : > { %369 = vst [vmem:[#allocation3] sm:$0xff] %v368_v15  ;;  %v563_v18 = vpop.f32.mrb[3].mxu0 }
 0x182   : > { %v376_v25 = vld [vmem:[#allocation3] sm:$0xff] }
 0x183   : > { %v381_v29 = vadd.f32 %v380_v26, %v376_v25 }
 0x185   : > { %v382_v30 = vmin.f32 %v381_v29, 20.0 }
 0x187   : > { %v383_v31 = vmul.f32 1.442695, %v382_v30 }
 0x189   : > { %621 = vpow2.f32 %v383_v31 }
 0x193   : > { %v622_v32 = vpop.eup %621 }
 0x194   : > { %v385_v33 = vadd.f32 2.0, %v622_v32 }
 0x196   : > { %v386_v34 = vmul.f32 %v622_v32, %v385_v33 }
 0x198   : > { %v387_v35 = vadd.f32 2.0, %v386_v34 }
 0x19a   : > { %623 = vrcp.f32 %v387_v35 }
 0x1a4   : > { %v624_v36 = vpop.eup %623 }
 0x1a5   : > { %v389_v37 = vmul.f32 %v624_v36, %v386_v34 }
 0x1a7   : > { %v390_v38 = vmul.f32 %v389_v37, %v381_v29 }
 0x1a9   : > { %391 = vst [vmem:[%s928_s12] sm:$0xff] %v390_v38  ;;  %v392_v39 = vrot.slane %v390_v38, 4 }
 0x1ab   : > { %v393_v40 = vadd.f32 %v392_v39, %v390_v38 }
 0x1ad   : > { %v394_v41 = vrot.slane %v393_v40, 2 }
 0x1af   : > { %v395_v42 = vadd.f32 %v394_v41, %v393_v40 }
 0x1b1   : > { %v396_v43 = vrot.slane %v395_v42, 1 }
 0x1b3   : > { %v397_v44 = vadd.f32 %v396_v43, %v395_v42 }
 0x1b5   : > { %v398_v45 = vmul.f32 0.125, %v397_v44 }
 0x1b7   : > { %v399_v46 = vsub.f32 %v390_v38, %v398_v45 }
 0x1b9   : > { %v400_v47 = vmul.f32 %v399_v46, %v399_v46 }
 0x1bb   : > { %v401_v48 = vrot.slane %v400_v47, 4 }
 0x1bd   : > { %v402_v49 = vadd.f32 %v401_v48, %v400_v47 }
 0x1bf   : > { %v403_v50 = vrot.slane %v402_v49, 2 }
 0x1c1   : > { %v404_v51 = vadd.f32 %v403_v50, %v402_v49 }
 0x1c3   : > { %v405_v52 = vrot.slane %v404_v51, 1 }
 0x1c5   : > { %v406_v53 = vadd.f32 %v405_v52, %v404_v51 }
 0x1c7   : > { %v407_v54 = vmul.f32 0.125, %v406_v53 }
 0x1c9   : > { %v408_v55 = vadd.f32 1e-05, %v407_v54 }
 0x1cb   : > { %625 = vrsqrt.f32 %v408_v55 }
 0x1d5   : > { %v626_v56 = vpop.eup %625 }
 0x1d6   : > { %v410_v57 = vmul.f32 %v626_v56, %v399_v46 }
 0x1d8   : > { %v415_v58 = vmul.f32 %v414_v27, %v410_v57 }
 0x1da   : > { %v420_v59 = vadd.f32 %v419_v28, %v415_v58 }
 0x1dc   : > { %424 = vst [vmem:[%s423_s14] sm:$0xff] %v420_v59 }
 0x1dd PF: > { %p40_p3 = scmp.ge.s32.totalorder %s848_s30, 9   ;;  %s973_s26 = smov %s745_s27 }
 0x1de   : > { %s974_s27 = smov %s749_s4  ;;  %s975_s4 = smov %s858_s11 }
 0x1df   : > { %s976_s28 = smov %s848_s30  ;;  %42 = sbr.rel (!%p40_p3) target bundleno = 59 (0x3b), region = 89 }
 0x1e6   :  { %447 = vsyncpa [#allocation11], 1 }
 0x1e7   :  { %449 = vsyncpa [#allocation11 + $0x1], 1 }

</bundles_post_ra>
